<compile_context>
chip_gen: v5e
topology: v5e:2x2
jax: 0.10.0
libtpu: 0.0.40
codegen_flags: <defaults>
</compile_context>

<pallas_src>
import functools

import jax
import jax.numpy as jnp
from jax import lax
from jax.experimental import pallas as pl
from jax.experimental.pallas import tpu as pltpu

ALPHA = 0.25
GAMMA = 2


def _round_up(x, m):
    return (x + m - 1) // m * m


def _focal_loss_kernel(pred_ref, tgt_ref, out_ref, *, n_total, tile_m,
                       tiles_per_split, alpha, gamma):
    p = pl.program_id(0)          # batch split (CORE_PARALLEL on v7x, size 1 elsewhere)
    i = pl.program_id(1)          # row tile within split (reduction axis)

    @pl.when(i == 0)
    def _():
        out_ref[...] = jnp.zeros_like(out_ref)

    logits = pred_ref[...].astype(jnp.float32)   # (tile_m, C): rows on sublanes, classes on lanes
    tgt = tgt_ref[...]                           # (tile_m, 1) int32
    tm, c = logits.shape

    # numerically-stable log-softmax pieces, reducing over the class (lane) axis
    m = jnp.max(logits, axis=1, keepdims=True)                    # (tile_m, 1)
    shifted = logits - m                                          # (tile_m, C)
    sumexp = jnp.sum(jnp.exp(shifted), axis=1, keepdims=True)     # (tile_m, 1)

    # target-logit gather via one-hot mask (no dynamic gather on TPU)
    class_ids = lax.broadcasted_iota(jnp.int32, (tm, c), 1)       # (tile_m, C)
    onehot = class_ids == tgt                                     # (tile_m, C)
    shifted_t = jnp.sum(jnp.where(onehot, shifted, 0.0), axis=1, keepdims=True)

    # ce = -log_softmax[target]; pt = softmax[target] = exp(-ce)
    ce = jnp.log(sumexp) - shifted_t                              # (tile_m, 1)
    pt = jnp.exp(-ce)                                             # narrow EUP exp, no 2nd one-hot reduce
    one_m_pt = 1.0 - pt
    if gamma == 2:
        w = one_m_pt * one_m_pt                                   # plain multiply, no pow
    else:
        w = one_m_pt ** gamma
    focal = alpha * w * ce                                        # (tile_m, 1)

    # mask OOB tail rows using program_id-derived global indices (never loaded data)
    row = lax.broadcasted_iota(jnp.int32, (tm, 1), 0)
    global_row = (p * tiles_per_split + i) * tile_m + row
    valid = global_row < n_total
    tile_sum = jnp.sum(jnp.where(valid, focal, 0.0))

    out_ref[...] += tile_sum.reshape(1, 1, 1)


def _num_batch_splits():
    """2 (one per TensorCore) only on v7x; elsewhere the split axis would just
    be a sequential outer loop, so keep it at 1."""
    try:
        kind = jax.devices()[0].device_kind.lower()
    except Exception:
        return 1
    return 2 if ("v7" in kind or "7x" in kind) else 1


def focal_loss(pred, target, *, alpha=ALPHA, gamma=GAMMA):
    """pred: (N, C) float logits (f32/bf16); target: (N,) int class indices.
    Returns the scalar mean focal loss (matches the PyTorch module)."""
    n, c = pred.shape
    num_splits = _num_batch_splits()

    # ---- adaptive, VMEM-aware tile size ------------------------------------
    itemsize = jnp.dtype(pred.dtype).itemsize
    sublane = max(8, 32 // max(itemsize, 1))          # 8 (f32) / 16 (bf16) / 32 (int8)
    lane_c = max(_round_up(c, 128), 128)              # lane-padded width of VMEM arrays
    # ~16 live lane-padded f32-wide arrays: double-buffered inputs + temporaries.
    per_row_bytes = 16 * lane_c * 4
    vmem_budget = 16 * 1024 * 1024                    # big headroom under 32 MiB scoped limit
    rows_cap = max(sublane, (vmem_budget // per_row_bytes) // sublane * sublane)
    # >= 2 tiles per split (overlapped double-buffering) with bounded padding waste.
    tile_m = max(sublane,
                 min(rows_cap, _round_up(int(pl.cdiv(n, num_splits * 2)), sublane)))
    tiles_per_split = int(pl.cdiv(n, num_splits * tile_m))
    last_block = int(pl.cdiv(n, tile_m)) - 1          # highest in-bounds row-block index

    def row_block(p, i, _t=tiles_per_split, _last=last_block):
        # Clamp so a (rare) fully-out-of-range step just re-reads the last real
        # block; its rows are then masked out via the program_id-derived mask.
        return (jnp.minimum(p * _t + i, _last), 0)

    if num_splits > 1:
        dim_sems = (pltpu.CORE_PARALLEL, pltpu.ARBITRARY)   # shard splits across v7x's 2 TCs
    else:
        dim_sems = ("arbitrary", "arbitrary")

    kernel = functools.partial(
        _focal_loss_kernel,
        n_total=n, tile_m=tile_m, tiles_per_split=tiles_per_split,
        alpha=float(alpha), gamma=gamma,
    )

    cost = pl.CostEstimate(
        flops=10 * n * c + 16 * n,
        transcendentals=n * (c + 2),                  # exp over (N,C) + log/exp per row
        bytes_accessed=n * c * itemsize + n * 4 + num_splits * 4,
    )

    partial_sums = pl.pallas_call(
        kernel,
        out_shape=jax.ShapeDtypeStruct((num_splits, 1, 1), jnp.float32),
        grid=(num_splits, tiles_per_split),
        in_specs=[
            pl.BlockSpec((tile_m, c), row_block),     # logits rows, original dtype
            pl.BlockSpec((tile_m, 1), row_block),     # targets as an (N, 1) int32 column
        ],
        out_specs=pl.BlockSpec((1, 1, 1), lambda p, i: (p, 0, 0)),
        compiler_params=pltpu.CompilerParams(
            dimension_semantics=dim_sems,
            vmem_limit_bytes=32 * 1024 * 1024,
        ),
        cost_estimate=cost,
    )(pred, target.astype(jnp.int32).reshape(n, 1))

    # finalize: combine per-split partial sums, divide by the true N exactly once
    return jnp.sum(partial_sums) / n


def _reference_focal_loss(pred, target, *, alpha=ALPHA, gamma=GAMMA):
    # pure-JAX reference of F.cross_entropy(reduction='none') + focal weighting
    logp = jax.nn.log_softmax(pred.astype(jnp.float32), axis=-1)
    ce = -jnp.take_along_axis(logp, target[:, None].astype(jnp.int32), axis=-1)[:, 0]
    pt = jnp.exp(-ce)
    return jnp.mean(alpha * (1.0 - pt) ** gamma * ce)


if __name__ == "__main__":
    key = jax.random.PRNGKey(0)
    k1, k2, k3, k4 = jax.random.split(key, 4)

    # small shape matching the module's expected inputs
    N, C = 8, 16
    pred = jax.random.normal(k1, (N, C), dtype=jnp.float32)
    target = jax.random.randint(k2, (N,), 0, C, dtype=jnp.int32)
    loss = focal_loss(pred, target)
    jax.block_until_ready(loss)
    ref = _reference_focal_loss(pred, target)
    assert jnp.allclose(loss, ref, atol=1e-5, rtol=1e-5), (loss, ref)

    # multi-tile case: exercises several grid steps and the masked partial tail block
    N2, C2 = 1500, 10
    pred2 = jax.random.normal(k3, (N2, C2), dtype=jnp.float32)
    target2 = jax.random.randint(k4, (N2,), 0, C2, dtype=jnp.int32)
    loss2 = focal_loss(pred2, target2)
    jax.block_until_ready(loss2)
    ref2 = _reference_focal_loss(pred2, target2)
    assert jnp.allclose(loss2, ref2, atol=1e-5, rtol=2e-4), (loss2, ref2)

    # bf16 pass-through: dtype is cast to f32 per tile inside the kernel
    pred3 = pred2.astype(jnp.bfloat16)
    loss3 = focal_loss(pred3, target2)
    jax.block_until_ready(loss3)
    ref3 = _reference_focal_loss(pred3, target2)
    assert jnp.allclose(loss3, ref3, atol=1e-4, rtol=1e-3), (loss3, ref3)

    print("KERNEL_OK")
</pallas_src>

<mosaic_0001>
module attributes {stable_mosaic.version = 11 : i64} {
  func.func @_focal_loss_kernel(%arg0: i32, %arg1: i32, %arg2: memref<8x16xf32, #tpu.memory_space<vmem>>, %arg3: memref<8x1xi32, #tpu.memory_space<vmem>>, %arg4: memref<1x1x1xf32, #tpu.memory_space<vmem>>) attributes {dimension_semantics = [#tpu.dimension_semantics<arbitrary>, #tpu.dimension_semantics<arbitrary>], iteration_bounds = array<i64: 1, 1>, scalar_prefetch = 0 : i64, scratch_operands = 0 : i64, tpu.core_type = #tpu.core_type<tc>, window_params = [{transform_indices = @transform_0, window_bounds = array<i64: 8, 16>}, {transform_indices = @transform_1, window_bounds = array<i64: 8, 1>}, {transform_indices = @transform_2, window_bounds = array<i64: 1, 1, 1>}]} {
    %c0_i32 = arith.constant 0 : i32
    %0 = arith.cmpi eq, %arg1, %c0_i32 : i32
    %1 = arith.extui %0 : i1 to i32
    %c0_i32_0 = arith.constant 0 : i32
    %2 = arith.cmpi ne, %1, %c0_i32_0 : i32
    scf.if %2 {
      %cst_19 = arith.constant 0.000000e+00 : f32
      %48 = vector.broadcast %cst_19 : f32 to vector<1x1x1xf32>
      %c0_20 = arith.constant 0 : index
      %c0_21 = arith.constant 0 : index
      %c0_22 = arith.constant 0 : index
      %49 = vector.load %arg4[%c0_20, %c0_21, %c0_22] : memref<1x1x1xf32, #tpu.memory_space<vmem>>, vector<1x1x1xf32>
      tpu.vector_store %arg4[%c0_20, %c0_21, %c0_22], %48 {strides = array<i32>} : memref<1x1x1xf32, #tpu.memory_space<vmem>>, vector<1x1x1xf32>,
    } else {
    }
    %c0 = arith.constant 0 : index
    %c0_1 = arith.constant 0 : index
    %3 = vector.load %arg2[%c0, %c0_1] : memref<8x16xf32, #tpu.memory_space<vmem>>, vector<8x16xf32>
    %c0_2 = arith.constant 0 : index
    %c0_3 = arith.constant 0 : index
    %4 = vector.load %arg3[%c0_2, %c0_3] : memref<8x1xi32, #tpu.memory_space<vmem>>, vector<8x1xi32>
    %cst = arith.constant dense<0xFF800000> : vector<8xf32>
    %5 = vector.multi_reduction <maximumf>, %3, %cst [1] : vector<8x16xf32> to vector<8xf32>
    %6 = vector.shape_cast %5 : vector<8xf32> to vector<8x1xf32>
    %7 = vector.broadcast %6 : vector<8x1xf32> to vector<8x16xf32>
    %8 = arith.subf %3, %7 : vector<8x16xf32>
    %9 = math.exp %8 : vector<8x16xf32>
    %cst_4 = arith.constant dense<0.000000e+00> : vector<8xf32>
    %10 = vector.multi_reduction <add>, %9, %cst_4 [1] : vector<8x16xf32> to vector<8xf32>
    %11 = vector.shape_cast %10 : vector<8xf32> to vector<8x1xf32>
    %12 = tpu.iota {dimensions = array<i32: 1>} : vector<8x16xi32>
    %13 = vector.broadcast %4 : vector<8x1xi32> to vector<8x16xi32>
    %14 = arith.cmpi eq, %12, %13 : vector<8x16xi32>
    %cst_5 = arith.constant 0.000000e+00 : f32
    %15 = vector.broadcast %cst_5 : f32 to vector<8x16xf32>
    %16 = arith.select %14, %8, %15 : vector<8x16xi1>, vector<8x16xf32>
    %cst_6 = arith.constant dense<0.000000e+00> : vector<8xf32>
    %17 = vector.multi_reduction <add>, %16, %cst_6 [1] : vector<8x16xf32> to vector<8xf32>
    %18 = vector.shape_cast %17 : vector<8xf32> to vector<8x1xf32>
    %19 = math.log %11 : vector<8x1xf32>
    %20 = arith.subf %19, %18 : vector<8x1xf32>
    %cst_7 = arith.constant 0.000000e+00 : f32
    %21 = vector.broadcast %cst_7 : f32 to vector<8x1xf32>
    %22 = arith.subf %21, %20 : vector<8x1xf32>
    %23 = math.exp %22 : vector<8x1xf32>
    %cst_8 = arith.constant 1.000000e+00 : f32
    %24 = vector.broadcast %cst_8 : f32 to vector<8x1xf32>
    %25 = arith.subf %24, %23 : vector<8x1xf32>
    %26 = arith.mulf %25, %25 : vector<8x1xf32>
    %cst_9 = arith.constant 2.500000e-01 : f32
    %27 = vector.broadcast %cst_9 : f32 to vector<8x1xf32>
    %28 = arith.mulf %27, %26 : vector<8x1xf32>
    %29 = arith.mulf %28, %20 : vector<8x1xf32>
    %30 = tpu.iota {dimensions = array<i32: 0>} : vector<8x1xi32>
    %c1_i32 = arith.constant 1 : i32
    %31 = arith.muli %arg0, %c1_i32 : i32
    %32 = arith.addi %31, %arg1 : i32
    %c8_i32 = arith.constant 8 : i32
    %33 = arith.muli %32, %c8_i32 : i32
    %34 = vector.broadcast %33 : i32 to vector<8x1xi32>
    %35 = arith.addi %34, %30 : vector<8x1xi32>
    %c8_i32_10 = arith.constant 8 : i32
    %36 = vector.broadcast %c8_i32_10 : i32 to vector<8x1xi32>
    %37 = arith.cmpi slt, %35, %36 : vector<8x1xi32>
    %cst_11 = arith.constant 0.000000e+00 : f32
    %38 = vector.broadcast %cst_11 : f32 to vector<8x1xf32>
    %39 = arith.select %37, %29, %38 : vector<8x1xi1>, vector<8x1xf32>
    %40 = vector.shape_cast %39 : vector<8x1xf32> to vector<1x8x1xf32>
    %cst_12 = arith.constant dense<0.000000e+00> : vector<1xf32>
    %41 = vector.multi_reduction <add>, %40, %cst_12 [1, 2] : vector<1x8x1xf32> to vector<1xf32>
    %42 = vector.shape_cast %41 : vector<1xf32> to vector<1x1x1xf32>
    %43 = vector.extract %42[0, 0, 0] : f32 from vector<1x1x1xf32>
    %c0_13 = arith.constant 0 : index
    %c0_14 = arith.constant 0 : index
    %c0_15 = arith.constant 0 : index
    %44 = vector.load %arg4[%c0_13, %c0_14, %c0_15] : memref<1x1x1xf32, #tpu.memory_space<vmem>>, vector<1x1x1xf32>
    %45 = vector.broadcast %43 : f32 to vector<1x1x1xf32>
    %46 = arith.addf %44, %45 : vector<1x1x1xf32>
    %c0_16 = arith.constant 0 : index
    %c0_17 = arith.constant 0 : index
    %c0_18 = arith.constant 0 : index
    %47 = vector.load %arg4[%c0_16, %c0_17, %c0_18] : memref<1x1x1xf32, #tpu.memory_space<vmem>>, vector<1x1x1xf32>
    tpu.vector_store %arg4[%c0_16, %c0_17, %c0_18], %46 {strides = array<i32>} : memref<1x1x1xf32, #tpu.memory_space<vmem>>, vector<1x1x1xf32>,
    return
  }
  func.func @transform_0(%arg0: i32, %arg1: i32) -> (i32, i32) {
    %c1_i32 = arith.constant 1 : i32
    %0 = arith.muli %arg0, %c1_i32 : i32
    %1 = arith.addi %0, %arg1 : i32
    %c0_i32 = arith.constant 0 : i32
    %2 = arith.minsi %1, %c0_i32 : i32
    %c0_i32_0 = arith.constant 0 : i32
    %c0_i32_1 = arith.constant 0 : i32
    return %2, %c0_i32_0 : i32, i32
  }
  func.func @transform_1(%arg0: i32, %arg1: i32) -> (i32, i32) {
    %c1_i32 = arith.constant 1 : i32
    %0 = arith.muli %arg0, %c1_i32 : i32
    %1 = arith.addi %0, %arg1 : i32
    %c0_i32 = arith.constant 0 : i32
    %2 = arith.minsi %1, %c0_i32 : i32
    %c0_i32_0 = arith.constant 0 : i32
    %c0_i32_1 = arith.constant 0 : i32
    return %2, %c0_i32_0 : i32, i32
  }
  func.func @transform_2(%arg0: i32, %arg1: i32) -> (i32, i32, i32) {
    %c0_i32 = arith.constant 0 : i32
    %c0_i32_0 = arith.constant 0 : i32
    %c0_i32_1 = arith.constant 0 : i32
    return %arg0, %c0_i32, %c0_i32_0 : i32, i32, i32
  }
}

</mosaic_0001>

<bundles_post_ra>
// kernel: tpu_custom_call.1
= control target key start
LH: loop header
LB: loop body
LE: loop exit
PB: predicated region body
PF: predicated region fallthrough
CT: control target
= control target key end

     0   :  { %vm74_vm0 = vcmask 130048   ;;  %s226_s0 = inlined_call_operand.vmem [shape: f32[8,16], index: 0, kind: input, shape index: {}]   ;;  %s227_s1 = inlined_call_operand.vmem [shape: s32[8,1], index: 1, kind: input, shape index: {}]   ;;  %s228_s2 = inlined_call_operand.hbm [shape: f32[1,1,1], index: 2, kind: output, shape index: {}]  }
   0x1   :  { %v72_v0 = vld [vmem:[%s226_s0] sm:$0xff] }
   0x2   :  { %7 = vsyncpa [#allocation3], 0  ;;  %v75_v1 = vsel %vm74_vm0, %v72_v0, -inf  ;;  %v194_v2 = vmov 0   ;;  %v73_v3 = vld [vmem:[%s227_s1] sm:$0xff]  ;;  %v84_v9 = vlaneseq  ;;  %vm112_vm2 = vcmask 7168  }
   0x3   :  { %161 = vset.pattern.permute.xlu0 %v194_v2  ;;  %vm70_vm3 = vcmask 0   ;;  %v195_v27 = vmov 0.0   ;;  %s196_s0 = smov [#allocation2]   ;;  %s135_s15 = sshll.u32 %s228_s2, 4  ;;  %s136_s15 = int_to_ptr.hbm [resolvable:$true] %s135_s15 }
   0x4   :  { %76 = vmax.xlane.f32.xlu0 %v75_v1  ;;  %v85_v10 = vand.u32 127, %v84_v9  ;;  %71 = vst.msk [vmem:[#allocation2] sm:$0x1] %vm70_vm3, %v195_v27  ;;  %s133_s1 = sshll.u32 %s196_s0, 4  ;;  %s134_s1 = int_to_ptr.vmem [resolvable:$true] %s133_s1 }
   0xb   :  { %v123_v35 = vld [vmem:[#allocation2] sm:$0x1] }
  0x18   :  { %87 = vperm.xlu0 %161, %v73_v3  }
  0x77   :  { %v77_v4 = vpop.xlane.xlu0 %76 }
  0x78   :  { %v78_v5 = vsub.f32 %v72_v0, %v77_v4 }
  0x7a   :  { %v79_v6 = vmul.f32 1.442695, %v78_v5 }
  0x7c   :  { %162 = vpow2.f32 %v79_v6 }
  0x82   :  { %v163_v7 = vpop.eup %162 }
  0x83   :  { %v81_v8 = vsel %vm74_vm0, %v163_v7, 0.0 }
  0x84   :  { %82 = vadd.xlane.f32.xlu1 %v81_v8 }
  0x8a   :  { %v88_v11 = vpop.permute.xlu0 %87 }
  0x8b   :  { %vm89_vm1 = vcmp.eq.s32.totalorder %v85_v10, %v88_v11 }
  0x8c   :  { %v90_v12 = vsel %vm89_vm1, %v78_v5, 0.0 }
  0x8d   :  { %v91_v13 = vsel %vm74_vm0, %v90_v12, 0.0 }
  0x8e   :  { %92 = vadd.xlane.f32.xlu1 %v91_v13 }
  0xf7   :  { %v83_v14 = vpop.xlane.xlu1 %82 }
  0xf8   :  { %164 = vlog2.f32 %v83_v14 }
  0xfe   :  { %v165_v15 = vpop.eup %164 }
  0xff   :  { %v95_v16 = vmul.f32 0.6931472, %v165_v15 }
 0x101   :  { %v93_v17 = vpop.xlane.xlu1 %92 }
 0x102   :  { %v96_v18 = vsub.f32 %v95_v16, %v93_v17 }
 0x104   :  { %v97_v19 = vsub.f32 0.0, %v96_v18 }
 0x106   :  { %v98_v20 = vmul.f32 1.442695, %v97_v19 }
 0x108   :  { %166 = vpow2.f32 %v98_v20 }
 0x10e   :  { %v167_v21 = vpop.eup %166 }
 0x10f   :  { %v100_v22 = vsub.f32 1.0, %v167_v21 }
 0x111   :  { %v101_v23 = vmul.f32 %v100_v22, %v100_v22 }
 0x113   :  { %v102_v24 = vmul.f32 0.25, %v101_v23 }
 0x115   :  { %v103_v25 = vmul.f32 %v102_v24, %v96_v18 }
 0x117   :  { %v113_v26 = vsel %vm112_vm2, %v103_v25, 0.0 }
 0x118   :  { %114 = vadd.xlane.f32.xlu2 %v113_v26 }
 0x18b   :  { %v115_v28 = vpop.xlane.xlu2 %114 }
 0x18c   :  { %v116_v29 = vrot.slane %v115_v28, 4 }
 0x18e   :  { %v117_v30 = vadd.f32 %v116_v29, %v115_v28 }
 0x190   :  { %v118_v31 = vrot.slane %v117_v30, 2 }
 0x192   :  { %v119_v32 = vadd.f32 %v118_v31, %v117_v30 }
 0x194   :  { %v120_v33 = vrot.slane %v119_v32, 1 }
 0x196   :  { %v121_v34 = vadd.f32 %v120_v33, %v119_v32 }
 0x198   :  { %156 = vpush %v121_v34 }
 0x1c9   :  { %s157_s16 = spop %156 }
 0x1ca   :  { %v124_v36 = vstv %s157_s16 }
 0x1cb   :  { %v125_v37 = vadd.f32 %v124_v36, %v123_v35 }
 0x1cd   :  { %127 = vst.msk [vmem:[#allocation2] sm:$0x1] %vm70_vm3, %v125_v37 }
 0x1ce   :  { %138 = dma.vmem_to_hbm [thread:$0]  %s134_s1, 16, %s136_s15, [#allocation3]  }
 0x1cf   :  { %192 = dma.done.wait [#allocation3], 16  }
 0x1d0   :  { %193 = vsyncadd [#allocation3], 4294967280 }
 0x1d1   :  { %143 = vsyncpa [#allocation3], 1 }

</bundles_post_ra>
